<compile_context>
chip_gen: v5e
topology: v5e:2x2
jax: 0.10.0
libtpu: 0.0.40
codegen_flags: <defaults>
</compile_context>

<pallas_src>
import math

import jax
import jax.numpy as jnp
from jax.experimental import pallas as pl
from jax.experimental.pallas import tpu as pltpu


def _lane_fold(dim):
    """Fold factor r so that r * dim is a multiple of 128 (lane-dense stores)."""
    if dim % 128 == 0:
        return 1
    return 128 // math.gcd(dim, 128)


def _chip_tile_target():
    """(target block bytes, vmem_limit_bytes or None), derived from the chip generation."""
    kind = ""
    try:
        kind = jax.devices()[0].device_kind.lower()
    except Exception:
        pass
    if "v5 lite" in kind or "v5lite" in kind or "v5e" in kind:
        return 2 << 20, None       # ~0.8 TB/s HBM; 16 MiB scoped-VMEM default
    if "v6" in kind or "trillium" in kind:
        return 4 << 20, None       # ~1.4 TB/s HBM; 32 MiB scoped default
    if "v7" in kind:
        return 8 << 20, 48 << 20   # 3.2 TB/s HBM: amortize ~0.35us/step; raise scoped VMEM
    return 4 << 20, None           # unknown / older generations: moderate default


def _choose_tile_rows(n_rows, lane_width_f32, target_bytes):
    """Sublane tile size: ~target_bytes of f32 per block, multiple of 8 (or full dim),
    capped so the grid keeps >= 4 steps when there is enough work (megacore balance)."""
    if n_rows <= 8:
        return n_rows
    max_rows = max(8, (target_bytes // (4 * lane_width_f32)) // 8 * 8)
    if n_rows >= 32:
        max_rows = min(max_rows, max(8, (n_rows // 4) // 8 * 8))
    if n_rows <= max_rows:
        return n_rows
    t = max_rows
    while t >= 8:
        if n_rows % t == 0:
            return t
        t -= 8
    return max_rows  # non-dividing: Pallas masks the padded tail block


# ----------------------------------------------------------------------------------
# Path A: default positions (abs_pos=None).  Batch-invariant -> one (M, L) slab,
# positions generated in-kernel; L = fold*D lanes so stores are full-width.
# ----------------------------------------------------------------------------------
def _pos_enc_default_kernel(freq_fold_ref, lane_base_ref, out_ref):
    # out block: (tile_m, L).  n(row, lane) = (m0 + row) * fold + lane // D, so
    #   out = n * freq[lane % D] = (m0 + row) * freq_fold[lane] + lane_base[lane]
    # with freq_fold[l] = fold * freq[l % D] and lane_base[l] = (l // D) * freq[l % D].
    tile_m = out_ref.shape[0]
    m0 = pl.program_id(0) * tile_m
    rows = (jax.lax.broadcasted_iota(jnp.int32, (tile_m, 1), 0) + m0).astype(jnp.float32)
    out_ref[...] = rows * freq_fold_ref[...] + lane_base_ref[...]


def _frequency_position_encoding_default(B, N, D, freq_fold_row, lane_base_row, fold):
    """pos_enc[b, n, d] = n * inv_freq_interleaved[d]; batch axis broadcast in wrapper."""
    L = fold * D
    n_pad = pl.cdiv(N, fold) * fold
    M = n_pad // fold
    target_bytes, vmem_limit = _chip_tile_target()
    tile_m = _choose_tile_rows(M, L, target_bytes)
    grid = (pl.cdiv(M, tile_m),)
    params = dict(dimension_semantics=("parallel",))
    if vmem_limit is not None:
        params["vmem_limit_bytes"] = vmem_limit

    out = pl.pallas_call(
        _pos_enc_default_kernel,
        out_shape=jax.ShapeDtypeStruct((M, L), jnp.float32),
        grid=grid,
        in_specs=[
            pl.BlockSpec((1, L), lambda m: (0, 0)),   # VMEM-resident constants
            pl.BlockSpec((1, L), lambda m: (0, 0)),
        ],
        out_specs=pl.BlockSpec((tile_m, L), lambda m: (m, 0)),
        compiler_params=pltpu.CompilerParams(**params),
        cost_estimate=pl.CostEstimate(
            flops=2 * M * L, transcendentals=0,
            bytes_accessed=M * L * 4 + 2 * L * 4),
    )(freq_fold_row, lane_base_row)
    # (M, L) row-major is bit-identical to (n_pad, D) row-major -> free reshape;
    # slice off padding, broadcast over the redundant batch axis outside the kernel.
    pos = out.reshape(n_pad, D)[:N]
    return jnp.broadcast_to(pos[None], (B, N, D))


# ----------------------------------------------------------------------------------
# Path B: explicit abs_pos, lane-folded.  abs_pos reshaped to (B*M, fold); the kernel
# expands each of the `fold` positions across D channels with broadcast-multiplies
# against one-hot-scaled frequency rows, keeping stores full-width (L lanes).
# ----------------------------------------------------------------------------------
def _pos_enc_abs_kernel(pos_ref, w_ref, out_ref):
    # pos block (tile_m, fold); w (fold, L) with w[j, l] = freq[l % D] iff l // D == j.
    # out[m, l] = pos[m, l // D] * freq[l % D]; the zero terms add exactly, so the
    # result is bit-exact with the reference outer product.
    # TODO(synk): for dims where fold > ~4 this should become a one-hot MXU matmul
    # (MXU is idle here) to keep the VPU op count per element low.
    fold = w_ref.shape[0]
    acc = pos_ref[:, 0:1] * w_ref[0:1, :]
    for j in range(1, fold):
        acc = acc + pos_ref[:, j:j + 1] * w_ref[j:j + 1, :]
    out_ref[...] = acc


def frequency_position_encoding(abs_pos, w_onehot, dim, fold):
    """FrequencyPositionEncoding.forward: abs_pos (B, N) -> (B, N, dim) float32."""
    B, N = abs_pos.shape
    L = fold * dim
    n_pad = pl.cdiv(N, fold) * fold
    M = n_pad // fold
    pos = abs_pos.astype(jnp.float32)
    if n_pad != N:
        pos = jnp.pad(pos, ((0, 0), (0, n_pad - N)))
    # Fold `fold` consecutive positions onto the lane axis (free row-major reshape).
    pos = pos.reshape(B * M, fold)

    target_bytes, vmem_limit = _chip_tile_target()
    # pos-block rows are lane-padded to 128 lanes in VMEM -> budget L + 128 lanes/row.
    tile_m = _choose_tile_rows(B * M, L + 128, target_bytes)
    grid = (pl.cdiv(B * M, tile_m),)
    params = dict(dimension_semantics=("parallel",))
    if vmem_limit is not None:
        params["vmem_limit_bytes"] = vmem_limit

    out = pl.pallas_call(
        _pos_enc_abs_kernel,
        out_shape=jax.ShapeDtypeStruct((B * M, L), jnp.float32),
        grid=grid,
        in_specs=[
            pl.BlockSpec((tile_m, fold), lambda i: (i, 0)),
            pl.BlockSpec((fold, L), lambda i: (0, 0)),    # VMEM-resident constant
        ],
        out_specs=pl.BlockSpec((tile_m, L), lambda i: (i, 0)),
        compiler_params=pltpu.CompilerParams(**params),
        cost_estimate=pl.CostEstimate(
            flops=(2 * fold - 1) * B * M * L, transcendentals=0,
            bytes_accessed=B * M * L * 4 + B * M * fold * 4 + fold * L * 4),
    )(pos, w_onehot)
    # (B*M, L) row-major == (B, n_pad, dim) row-major -> free reshape; drop padding.
    return out.reshape(B, n_pad, dim)[:, :N]


class RotarySupportPallas:
    """JAX/Pallas equivalent of RotarySupport(InputAdapter)."""

    def __init__(self, rotated_channels_per_head: int, num_input_channels: int):
        assert rotated_channels_per_head % 2 == 0
        self._num_input_channels = num_input_channels
        dim = rotated_channels_per_head
        self._dim = dim
        # FrequencyPositionEncoding buffer (matches torch init):
        #   inv_freq = 1 / 10000 ** (arange(0, dim, 2) / dim)
        self.inv_freq = 1.0 / (
            10000.0 ** (jnp.arange(0, dim, 2, dtype=jnp.float32) / dim)
        )
        # einops repeat '... f -> ... (f r)', r=2  ==  consecutive duplication.
        self.inv_freq_interleaved = jnp.repeat(self.inv_freq, 2)

        # Lane-fold factor so fold*dim is a multiple of 128 (full-width stores).
        self._fold = _lane_fold(dim)
        r, L = self._fold, self._fold * dim
        freq_tiled = jnp.tile(self.inv_freq_interleaved, r)          # f[l % D]
        lane_group = jnp.arange(L) // dim                            # l // D
        # Path A constants: out = row * (r * f[l%D]) + (l//D) * f[l%D]
        self._freq_fold_row = (r * freq_tiled).reshape(1, L)
        self._lane_base_row = (lane_group.astype(jnp.float32) * freq_tiled).reshape(1, L)
        # Path B constant: one-hot-scaled expansion rows, w[j, l] = f[l%D] iff l//D == j.
        onehot = (jnp.arange(r)[:, None] == lane_group[None, :]).astype(jnp.float32)
        self._w_onehot = onehot * freq_tiled[None, :]

    @property
    def num_input_channels(self):
        return self._num_input_channels

    def __call__(self, x, abs_pos=None):
        b, n = x.shape[0], x.shape[1]
        if abs_pos is None:
            # positions(*x.shape): arange over the sequence dim (batch-invariant), so
            # the encoding is computed once as an (N, D) slab and broadcast over batch.
            pos_enc = _frequency_position_encoding_default(
                b, n, self._dim, self._freq_fold_row, self._lane_base_row, self._fold)
        else:
            pos_enc = frequency_position_encoding(
                abs_pos, self._w_onehot, self._dim, self._fold)
        # TODO(synk): InputAdapter defines no forward (RotarySupport is a mixin whose
        # super().forward dispatches to a concrete adapter not included here), so the
        # first tuple element is x passed through unchanged.
        return x, pos_enc


if __name__ == "__main__":
    key = jax.random.PRNGKey(0)
    B, N, C = 2, 8, 32
    rotated_channels_per_head = 32

    x = jax.random.normal(key, (B, N, C), dtype=jnp.float32)
    adapter = RotarySupportPallas(rotated_channels_per_head, num_input_channels=C)

    # reference (pure JAX): outer product + consecutive repeat r=2
    def ref(p):
        return jnp.repeat(p[:, :, None] * adapter.inv_freq[None, None, :], 2, axis=-1)

    # default path (abs_pos=None): in-kernel positions, batch broadcast in the wrapper
    x_out, pos_enc = adapter(x)
    jax.block_until_ready((x_out, pos_enc))
    pos_default = jnp.broadcast_to(jnp.arange(N, dtype=jnp.float32)[None, :], (B, N))
    assert x_out.shape == (B, N, C)
    assert pos_enc.shape == (B, N, rotated_channels_per_head)
    assert pos_enc.dtype == jnp.float32
    assert jnp.allclose(pos_enc, ref(pos_default), rtol=1e-5, atol=1e-6), "default-path mismatch"
    assert jnp.allclose(x_out, x), "x passthrough mismatch"

    # explicit abs_pos path (lane-folded, full-width stores)
    abs_pos = 100.0 * jax.random.uniform(jax.random.PRNGKey(1), (B, N), dtype=jnp.float32)
    _, pos_enc2 = adapter(x, abs_pos)
    jax.block_until_ready(pos_enc2)
    assert jnp.allclose(pos_enc2, ref(abs_pos), rtol=1e-5, atol=1e-6), "abs_pos-path mismatch"

    # sequence length not a multiple of the lane-fold factor exercises the padding path
    N2 = 10
    x2 = jax.random.normal(jax.random.PRNGKey(2), (B, N2, C), dtype=jnp.float32)
    abs_pos2 = 10.0 * jax.random.uniform(jax.random.PRNGKey(3), (B, N2), dtype=jnp.float32)
    _, pos_enc3 = adapter(x2)
    _, pos_enc4 = adapter(x2, abs_pos2)
    jax.block_until_ready((pos_enc3, pos_enc4))
    pos_default2 = jnp.broadcast_to(jnp.arange(N2, dtype=jnp.float32)[None, :], (B, N2))
    assert pos_enc3.shape == (B, N2, rotated_channels_per_head)
    assert jnp.allclose(pos_enc3, ref(pos_default2), rtol=1e-5, atol=1e-6), "padded default mismatch"
    assert jnp.allclose(pos_enc4, ref(abs_pos2), rtol=1e-5, atol=1e-6), "padded abs_pos mismatch"

    print("KERNEL_OK")
</pallas_src>

<mosaic_0001>
module attributes {stable_mosaic.version = 11 : i64} {
  func.func @_pos_enc_default_kernel(%arg0: i32, %arg1: memref<1x128xf32, #tpu.memory_space<vmem>>, %arg2: memref<1x128xf32, #tpu.memory_space<vmem>>, %arg3: memref<2x128xf32, #tpu.memory_space<vmem>>) attributes {dimension_semantics = [#tpu.dimension_semantics<parallel>], iteration_bounds = array<i64: 1>, scalar_prefetch = 0 : i64, scratch_operands = 0 : i64, tpu.core_type = #tpu.core_type<tc>, window_params = [{pipeline_mode = #tpu.pipeline_mode<synchronous>, transform_indices = @transform_0, window_bounds = array<i64: 1, 128>}, {pipeline_mode = #tpu.pipeline_mode<synchronous>, transform_indices = @transform_1, window_bounds = array<i64: 1, 128>}, {transform_indices = @transform_2, window_bounds = array<i64: 2, 128>}]} {
    %c2_i32 = arith.constant 2 : i32
    %0 = arith.muli %arg0, %c2_i32 : i32
    %1 = tpu.iota {dimensions = array<i32: 0>} : vector<2x1xi32>
    %2 = vector.broadcast %0 : i32 to vector<2x1xi32>
    %3 = arith.addi %1, %2 : vector<2x1xi32>
    %4 = arith.sitofp %3 : vector<2x1xi32> to vector<2x1xf32>
    %c0 = arith.constant 0 : index
    %c0_0 = arith.constant 0 : index
    %5 = vector.load %arg1[%c0, %c0_0] : memref<1x128xf32, #tpu.memory_space<vmem>>, vector<1x128xf32>
    %6 = vector.broadcast %4 : vector<2x1xf32> to vector<2x128xf32>
    %7 = vector.broadcast %5 : vector<1x128xf32> to vector<2x128xf32>
    %8 = arith.mulf %6, %7 : vector<2x128xf32>
    %c0_1 = arith.constant 0 : index
    %c0_2 = arith.constant 0 : index
    %9 = vector.load %arg2[%c0_1, %c0_2] : memref<1x128xf32, #tpu.memory_space<vmem>>, vector<1x128xf32>
    %10 = vector.broadcast %9 : vector<1x128xf32> to vector<2x128xf32>
    %11 = arith.addf %8, %10 : vector<2x128xf32>
    %c0_3 = arith.constant 0 : index
    %c0_4 = arith.constant 0 : index
    %12 = vector.load %arg3[%c0_3, %c0_4] : memref<2x128xf32, #tpu.memory_space<vmem>>, vector<2x128xf32>
    tpu.vector_store %arg3[%c0_3, %c0_4], %11 {strides = array<i32>} : memref<2x128xf32, #tpu.memory_space<vmem>>, vector<2x128xf32>,
    return
  }
  func.func @transform_0(%arg0: i32) -> (i32, i32) {
    %c0_i32 = arith.constant 0 : i32
    %c0_i32_0 = arith.constant 0 : i32
    %c0_i32_1 = arith.constant 0 : i32
    return %c0_i32, %c0_i32_0 : i32, i32
  }
  func.func @transform_1(%arg0: i32) -> (i32, i32) {
    %c0_i32 = arith.constant 0 : i32
    %c0_i32_0 = arith.constant 0 : i32
    %c0_i32_1 = arith.constant 0 : i32
    return %c0_i32, %c0_i32_0 : i32, i32
  }
  func.func @transform_2(%arg0: i32) -> (i32, i32) {
    %c0_i32 = arith.constant 0 : i32
    %c0_i32_0 = arith.constant 0 : i32
    return %arg0, %c0_i32 : i32, i32
  }
}

</mosaic_0001>

<bundles_post_ra>
// kernel: tpu_custom_call.1
= control target key start
LH: loop header
LB: loop body
LE: loop exit
PB: predicated region body
PF: predicated region fallthrough
CT: control target
= control target key end

     0   :  { %7 = vsyncpa [#allocation3], 0  ;;  %s185_s0 = inlined_call_operand.hbm [shape: f32[1,128], index: 0, kind: input, shape index: {}]   ;;  %s186_s1 = inlined_call_operand.hbm [shape: f32[1,128], index: 1, kind: input, shape index: {}]   ;;  %s187_s2 = inlined_call_operand.hbm [shape: f32[2,128], index: 2, kind: output, shape index: {}]  }
   0x1   :  { %8 = vsyncpa [#allocation6], 0 }
   0x2   :  { %9 = vsyncpa [#allocation4], 0  ;;  %s15_s11 = sshll.u32 %s185_s0, 4  ;;  %s158_s12 = smov [#allocation2]   ;;  %s16_s11 = int_to_ptr.hbm [resolvable:$true] %s15_s11 }
   0x3   :  { %s17_s13 = sshll.u32 %s158_s12, 4  ;;  %s26_s16 = sshll.u32 %s186_s1, 4  ;;  %s18_s13 = int_to_ptr.vmem [resolvable:$true] %s17_s13  ;;  %s27_s16 = int_to_ptr.hbm [resolvable:$true] %s26_s16 }
   0x4   :  { %20 = dma.hbm_to_vmem [thread:$0]  %s16_s11, 16, %s18_s13, [#allocation3]  }
   0x5   :  { %s159_s17 = smov [#allocation5]  }
   0x6   :  { %s28_s18 = sshll.u32 %s159_s17, 4  ;;  %s29_s18 = int_to_ptr.vmem [resolvable:$true] %s28_s18 }
   0x7   :  { %31 = dma.hbm_to_vmem [thread:$0]  %s27_s16, 16, %s29_s18, [#allocation6]  }
   0x8   :  { %152 = dma.done.wait [#allocation3], 16  }
   0x9   :  { %153 = vsyncadd [#allocation3], 4294967280 }
   0xa   :  { %154 = dma.done.wait [#allocation6], 16  }
   0xb   :  { %155 = vsyncadd [#allocation6], 4294967280  ;;  %v41_v0 = vlaneseq  ;;  %v78_v3 = vld [vmem:[#allocation2] ss:$0 sm:$0xff]  ;;  %v79_v4 = vld [vmem:[#allocation5] ss:$0 sm:$0xff] }
   0xc   :  { %s160_s0 = smov [#allocation7]   ;;  %s64_s1 = sshll.u32 %s187_s2, 4  ;;  %s65_s1 = int_to_ptr.hbm [resolvable:$true] %s64_s1 }
   0xd   :  { %v42_v1 = vshrl.u32 %v41_v0, 7  ;;  %s62_s19 = sshll.u32 %s160_s0, 4  ;;  %s63_s19 = int_to_ptr.vmem [resolvable:$true] %s62_s19 }
   0xf   :  { %v45_v2 = vcvt.s32.f32 %v42_v1 }
  0x11   :  { %v50_v5 = vmul.f32 %v78_v3, %v45_v2 }
  0x13   :  { %v55_v6 = vadd.f32 %v79_v4, %v50_v5 }
  0x15   :  { %56 = vst [vmem:[#allocation7] sm:$0x3] %v55_v6 }
  0x16   :  { %67 = dma.vmem_to_hbm [thread:$0]  %s63_s19, 32, %s65_s1, [#allocation4]  }
  0x17   :  { %156 = dma.done.wait [#allocation4], 32  }
  0x18   :  { %157 = vsyncadd [#allocation4], 4294967264 }
  0x19   :  { %72 = vsyncpa [#allocation3], 1 }
  0x1a   :  { %73 = vsyncpa [#allocation6], 1 }
  0x1b   :  { %74 = vsyncpa [#allocation4], 1 }

</bundles_post_ra>
